<compile_context>
chip_gen: v7x
topology: tpu7x:2x2x1
jax: 0.10.0
libtpu: 0.0.40
codegen_flags: <defaults>
</compile_context>

<pallas_src>
import jax
import jax.numpy as jnp
from jax.experimental import pallas as pl
from jax.experimental.pallas import tpu as pltpu


def _round_up(n, m):
    return ((n + m - 1) // m) * m


def generator_kernel(x_ref,
                     w1_ref, b1_ref,
                     w2_ref, b2_ref,
                     w3_ref, b3_ref,
                     w4_ref, b4_ref,
                     o_ref):
    """relu/relu/relu/tanh MLP on one batch tile; weights resident in VMEM."""

    def dense(h_bf16, w_ref, b_ref):
        # bf16 x bf16 on the MXU, f32 accumulate; bias add stays f32 (VPU).
        return jnp.dot(h_bf16, w_ref[...],
                       preferred_element_type=jnp.float32) + b_ref[...]

    # Eager bf16 downcast at each ReLU: same value as casting inside the next
    # dot, but the live intermediate tile is half the size (halves vreg/spill
    # pressure -- matters most on v5e's single vector-store slot).
    h = jnp.maximum(dense(x_ref[...], w1_ref, b1_ref), 0.0).astype(jnp.bfloat16)
    h = jnp.maximum(dense(h, w2_ref, b2_ref), 0.0).astype(jnp.bfloat16)
    h = jnp.maximum(dense(h, w3_ref, b3_ref), 0.0).astype(jnp.bfloat16)
    # Linear4 + tanh (tanh lowers to the EUP -- separate bundle slot from VALU).
    o_ref[...] = jnp.tanh(dense(h, w4_ref, b4_ref)).astype(o_ref.dtype)


def _choose_batch_tile(B, batch_tile):
    # Small B: single tile covering everything (rounded to a sublane multiple).
    bt = min(batch_tile, _round_up(B, 8))
    # Large B: cap so the grid has >= 2 steps (v7x "parallel" sharding across its
    # two TensorCores needs >= 2 grid steps) and keep the M dim 128-aligned for
    # the v5e 4x128^2 MXU.  VMEM footprint at bt=2048 is ~2.5 MiB (bf16 in/out
    # double-buffers + 0.25 MiB weights) -- far under every generation's scoped
    # VMEM, so no vmem_limit_bytes override is needed.
    if B >= 256:
        bt = min(bt, _round_up(pl.cdiv(B, 2), 128))
    bt = max(8, (bt // 8) * 8)
    return bt


def generator_forward(x, params, *, batch_tile=2048, out_dtype=jnp.bfloat16):
    """x: (B, noise_size) float32.  params: dict of (in,out) weights / (1,out) biases.

    Returns (B, img_size**2) in `out_dtype` (bf16 by default -- intentional
    precision trade-off; pass out_dtype=jnp.float32 for an f32 output).
    """
    B, noise_size = x.shape

    # bf16 on the HBM side for weights and activations; biases stay f32.
    x_bf16 = x.astype(jnp.bfloat16)
    w1 = params["w1"].astype(jnp.bfloat16)
    w2 = params["w2"].astype(jnp.bfloat16)
    w3 = params["w3"].astype(jnp.bfloat16)
    w4 = params["w4"].astype(jnp.bfloat16)
    b1 = params["b1"].astype(jnp.float32)
    b2 = params["b2"].astype(jnp.float32)
    b3 = params["b3"].astype(jnp.float32)
    b4 = params["b4"].astype(jnp.float32)

    h1, h2, h3 = w1.shape[1], w2.shape[1], w3.shape[1]
    img_size = w4.shape[1]

    bt = _choose_batch_tile(B, batch_tile)
    # No host-side pad / slice: ragged last block is masked by Pallas (boundary
    # output writes are dropped; padded garbage rows stay finite through relu/tanh
    # and never reach HBM).
    grid = (pl.cdiv(B, bt),)

    # Grid-invariant operands: whole array resident in VMEM (no double-buffering).
    resident = pl.BlockSpec(memory_space=pltpu.MemorySpace.VMEM)

    in_specs = [
        pl.BlockSpec((bt, noise_size), lambda i: (i, 0)),  # activations: batch-tiled
        resident, resident,                                # w1, b1
        resident, resident,                                # w2, b2
        resident, resident,                                # w3, b3
        resident, resident,                                # w4, b4
    ]
    out_spec = pl.BlockSpec((bt, img_size), lambda i: (i, 0))

    # Advisory cost hint for XLA's scheduler.
    rows = grid[0] * bt
    flops = 2 * rows * (noise_size * h1 + h1 * h2 + h2 * h3 + h3 * img_size)
    weight_bytes = sum(int(a.size) * a.dtype.itemsize
                       for a in (w1, b1, w2, b2, w3, b3, w4, b4))
    bytes_accessed = (int(x_bf16.size) * x_bf16.dtype.itemsize
                      + weight_bytes
                      + B * img_size * jnp.dtype(out_dtype).itemsize)
    cost = pl.CostEstimate(flops=flops,
                           transcendentals=rows * img_size,
                           bytes_accessed=bytes_accessed)

    return pl.pallas_call(
        generator_kernel,
        out_shape=jax.ShapeDtypeStruct((B, img_size), out_dtype),
        grid_spec=pltpu.PrefetchScalarGridSpec(
            num_scalar_prefetch=0,
            grid=grid,
            in_specs=in_specs,
            out_specs=out_spec,
        ),
        compiler_params=pltpu.CompilerParams(
            dimension_semantics=("parallel",),   # batch steps shard across TCs (v7x)
        ),
        cost_estimate=cost,
    )(x_bf16, w1, b1, w2, b2, w3, b3, w4, b4)


def init_params(key, noise_size, h1, h2, h3, img_size_sq):
    """Deterministic synthetic params. Shapes match nn.Linear (stored transposed)."""
    ks = jax.random.split(key, 8)

    def linear(kw, kb, fan_in, fan_out):
        # PyTorch nn.Linear default init: U(-1/sqrt(fan_in), 1/sqrt(fan_in))
        bound = 1.0 / jnp.sqrt(fan_in)
        w = jax.random.uniform(kw, (fan_in, fan_out), jnp.float32, -bound, bound)
        b = jax.random.uniform(kb, (1, fan_out), jnp.float32, -bound, bound)
        return w, b

    w1, b1 = linear(ks[0], ks[1], noise_size, h1)
    w2, b2 = linear(ks[2], ks[3], h1, h2)
    w3, b3 = linear(ks[4], ks[5], h2, h3)
    w4, b4 = linear(ks[6], ks[7], h3, img_size_sq)
    return dict(w1=w1, b1=b1, w2=w2, b2=b2, w3=w3, b3=b3, w4=w4, b4=b4)


def reference_forward(x, p):
    """Pure-JAX reference with the same bf16-weight / f32-accumulate numerics."""
    def dense(h, w, b):
        return jnp.dot(h.astype(jnp.bfloat16), w.astype(jnp.bfloat16),
                       preferred_element_type=jnp.float32) + b

    h = jnp.maximum(dense(x, p["w1"], p["b1"]), 0.0)
    h = jnp.maximum(dense(h, p["w2"], p["b2"]), 0.0)
    h = jnp.maximum(dense(h, p["w3"], p["b3"]), 0.0)
    return jnp.tanh(dense(h, p["w4"], p["b4"]))


if __name__ == "__main__":
    # config = {'img_size': 16, 'hidden_size1': 64, 'hidden_size2': 128,
    #           'hidden_size3': 256, 'noise_size': 32}
    noise_size, h1, h2, h3 = 32, 64, 128, 256
    img_size_sq = 16 ** 2  # img_size ** 2

    key = jax.random.PRNGKey(0)
    kx, kx2, kp = jax.random.split(key, 3)
    params = init_params(kp, noise_size, h1, h2, h3, img_size_sq)

    # Small test: B=8 -> single grid step, everything resident, bf16 output.
    x = jax.random.normal(kx, (8, noise_size), dtype=jnp.float32)
    out = jax.block_until_ready(generator_forward(x, params))
    ref = reference_forward(x, params)
    assert out.shape == (8, img_size_sq), out.shape
    assert out.dtype == jnp.bfloat16, out.dtype
    assert jnp.allclose(out.astype(jnp.float32), ref, atol=2e-2, rtol=2e-2), \
        "mismatch vs JAX reference (B=8)"

    # Ragged multi-step test: B=300 with batch_tile=128 -> 3 "parallel" grid steps,
    # last block ragged (44 valid rows) exercising Pallas boundary masking with no
    # host-side pad/slice copies.
    x2 = jax.random.normal(kx2, (300, noise_size), dtype=jnp.float32)
    out2 = jax.block_until_ready(
        generator_forward(x2, params, batch_tile=128, out_dtype=jnp.float32))
    ref2 = reference_forward(x2, params)
    assert out2.shape == (300, img_size_sq), out2.shape
    assert out2.dtype == jnp.float32, out2.dtype
    assert jnp.allclose(out2, ref2, atol=2e-2, rtol=2e-2), \
        "mismatch vs JAX reference (B=300, ragged)"
    assert bool(jnp.all(jnp.isfinite(out2))), "non-finite values in output"

    print("KERNEL_OK")
</pallas_src>

<mosaic_0001>
module attributes {stable_mosaic.version = 11 : i64} {
  func.func @generator_kernel(%arg0: i32, %arg1: memref<8x32xbf16, #tpu.memory_space<vmem>>, %arg2: memref<32x64xbf16, #tpu.memory_space<vmem>>, %arg3: memref<1x64xf32, #tpu.memory_space<vmem>>, %arg4: memref<64x128xbf16, #tpu.memory_space<vmem>>, %arg5: memref<1x128xf32, #tpu.memory_space<vmem>>, %arg6: memref<128x256xbf16, #tpu.memory_space<vmem>>, %arg7: memref<1x256xf32, #tpu.memory_space<vmem>>, %arg8: memref<256x256xbf16, #tpu.memory_space<vmem>>, %arg9: memref<1x256xf32, #tpu.memory_space<vmem>>, %arg10: memref<8x256xbf16, #tpu.memory_space<vmem>>) attributes {dimension_semantics = [#tpu.dimension_semantics<parallel>], iteration_bounds = array<i64: 1>, scalar_prefetch = 0 : i64, scratch_operands = 0 : i64, tpu.core_type = #tpu.core_type<tc>, window_params = [{transform_indices = @transform_0, window_bounds = array<i64: 8, 32>}, {pipeline_mode = #tpu.pipeline_mode<synchronous>, transform_indices = @transform_1, window_bounds = array<i64: 32, 64>}, {pipeline_mode = #tpu.pipeline_mode<synchronous>, transform_indices = @transform_2, window_bounds = array<i64: 1, 64>}, {pipeline_mode = #tpu.pipeline_mode<synchronous>, transform_indices = @transform_3, window_bounds = array<i64: 64, 128>}, {pipeline_mode = #tpu.pipeline_mode<synchronous>, transform_indices = @transform_4, window_bounds = array<i64: 1, 128>}, {pipeline_mode = #tpu.pipeline_mode<synchronous>, transform_indices = @transform_5, window_bounds = array<i64: 128, 256>}, {pipeline_mode = #tpu.pipeline_mode<synchronous>, transform_indices = @transform_6, window_bounds = array<i64: 1, 256>}, {pipeline_mode = #tpu.pipeline_mode<synchronous>, transform_indices = @transform_7, window_bounds = array<i64: 256, 256>}, {pipeline_mode = #tpu.pipeline_mode<synchronous>, transform_indices = @transform_8, window_bounds = array<i64: 1, 256>}, {transform_indices = @transform_9, window_bounds = array<i64: 8, 256>}]} {
    %c0 = arith.constant 0 : index
    %c0_0 = arith.constant 0 : index
    %0 = vector.load %arg1[%c0, %c0_0] : memref<8x32xbf16, #tpu.memory_space<vmem>>, vector<8x32xbf16>
    %c0_1 = arith.constant 0 : index
    %c0_2 = arith.constant 0 : index
    %1 = vector.load %arg2[%c0_1, %c0_2] : memref<32x64xbf16, #tpu.memory_space<vmem>>, vector<32x64xbf16>
    %cst = arith.constant dense<0.000000e+00> : vector<8x64xf32>
    %2 = tpu.matmul %0, %1, %cst {dimension_numbers = #tpu.dot_dimension_numbers<[1], [0], [0], [1], [0, 0, 1, 1], [], []>} : vector<8x32xbf16>, vector<32x64xbf16>, vector<8x64xf32> -> vector<8x64xf32>
    %c0_3 = arith.constant 0 : index
    %c0_4 = arith.constant 0 : index
    %3 = vector.load %arg3[%c0_3, %c0_4] : memref<1x64xf32, #tpu.memory_space<vmem>>, vector<1x64xf32>
    %4 = vector.broadcast %3 : vector<1x64xf32> to vector<8x64xf32>
    %5 = arith.addf %2, %4 : vector<8x64xf32>
    %cst_5 = arith.constant 0.000000e+00 : f32
    %6 = vector.broadcast %cst_5 : f32 to vector<8x64xf32>
    %7 = arith.maximumf %5, %6 : vector<8x64xf32>
    %8 = arith.truncf %7 : vector<8x64xf32> to vector<8x64xbf16>
    %c0_6 = arith.constant 0 : index
    %c0_7 = arith.constant 0 : index
    %9 = vector.load %arg4[%c0_6, %c0_7] : memref<64x128xbf16, #tpu.memory_space<vmem>>, vector<64x128xbf16>
    %cst_8 = arith.constant dense<0.000000e+00> : vector<8x128xf32>
    %10 = tpu.matmul %8, %9, %cst_8 {dimension_numbers = #tpu.dot_dimension_numbers<[1], [0], [0], [1], [0, 0, 1, 1], [], []>} : vector<8x64xbf16>, vector<64x128xbf16>, vector<8x128xf32> -> vector<8x128xf32>
    %c0_9 = arith.constant 0 : index
    %c0_10 = arith.constant 0 : index
    %11 = vector.load %arg5[%c0_9, %c0_10] : memref<1x128xf32, #tpu.memory_space<vmem>>, vector<1x128xf32>
    %12 = vector.broadcast %11 : vector<1x128xf32> to vector<8x128xf32>
    %13 = arith.addf %10, %12 : vector<8x128xf32>
    %cst_11 = arith.constant 0.000000e+00 : f32
    %14 = vector.broadcast %cst_11 : f32 to vector<8x128xf32>
    %15 = arith.maximumf %13, %14 : vector<8x128xf32>
    %16 = arith.truncf %15 : vector<8x128xf32> to vector<8x128xbf16>
    %c0_12 = arith.constant 0 : index
    %c0_13 = arith.constant 0 : index
    %17 = vector.load %arg6[%c0_12, %c0_13] : memref<128x256xbf16, #tpu.memory_space<vmem>>, vector<128x256xbf16>
    %cst_14 = arith.constant dense<0.000000e+00> : vector<8x256xf32>
    %18 = tpu.matmul %16, %17, %cst_14 {dimension_numbers = #tpu.dot_dimension_numbers<[1], [0], [0], [1], [0, 0, 1, 1], [], []>} : vector<8x128xbf16>, vector<128x256xbf16>, vector<8x256xf32> -> vector<8x256xf32>
    %c0_15 = arith.constant 0 : index
    %c0_16 = arith.constant 0 : index
    %19 = vector.load %arg7[%c0_15, %c0_16] : memref<1x256xf32, #tpu.memory_space<vmem>>, vector<1x256xf32>
    %20 = vector.broadcast %19 : vector<1x256xf32> to vector<8x256xf32>
    %21 = arith.addf %18, %20 : vector<8x256xf32>
    %cst_17 = arith.constant 0.000000e+00 : f32
    %22 = vector.broadcast %cst_17 : f32 to vector<8x256xf32>
    %23 = arith.maximumf %21, %22 : vector<8x256xf32>
    %24 = arith.truncf %23 : vector<8x256xf32> to vector<8x256xbf16>
    %c0_18 = arith.constant 0 : index
    %c0_19 = arith.constant 0 : index
    %25 = vector.load %arg8[%c0_18, %c0_19] : memref<256x256xbf16, #tpu.memory_space<vmem>>, vector<256x256xbf16>
    %cst_20 = arith.constant dense<0.000000e+00> : vector<8x256xf32>
    %26 = tpu.matmul %24, %25, %cst_20 {dimension_numbers = #tpu.dot_dimension_numbers<[1], [0], [0], [1], [0, 0, 1, 1], [], []>} : vector<8x256xbf16>, vector<256x256xbf16>, vector<8x256xf32> -> vector<8x256xf32>
    %c0_21 = arith.constant 0 : index
    %c0_22 = arith.constant 0 : index
    %27 = vector.load %arg9[%c0_21, %c0_22] : memref<1x256xf32, #tpu.memory_space<vmem>>, vector<1x256xf32>
    %28 = vector.broadcast %27 : vector<1x256xf32> to vector<8x256xf32>
    %29 = arith.addf %26, %28 : vector<8x256xf32>
    %30 = math.tanh %29 : vector<8x256xf32>
    %31 = arith.truncf %30 : vector<8x256xf32> to vector<8x256xbf16>
    %c0_23 = arith.constant 0 : index
    %c0_24 = arith.constant 0 : index
    %32 = vector.load %arg10[%c0_23, %c0_24] : memref<8x256xbf16, #tpu.memory_space<vmem>>, vector<8x256xbf16>
    tpu.vector_store %arg10[%c0_23, %c0_24], %31 {strides = array<i32>} : memref<8x256xbf16, #tpu.memory_space<vmem>>, vector<8x256xbf16>,
    return
  }
  func.func @transform_0(%arg0: i32) -> (i32, i32) {
    %c0_i32 = arith.constant 0 : i32
    %c0_i32_0 = arith.constant 0 : i32
    return %arg0, %c0_i32 : i32, i32
  }
  func.func @transform_1(%arg0: i32) -> (i32, i32) {
    %c0_i32 = arith.constant 0 : i32
    %c0_i32_0 = arith.constant 0 : i32
    %c0_i32_1 = arith.constant 0 : i32
    return %c0_i32, %c0_i32_0 : i32, i32
  }
  func.func @transform_2(%arg0: i32) -> (i32, i32) {
    %c0_i32 = arith.constant 0 : i32
    %c0_i32_0 = arith.constant 0 : i32
    %c0_i32_1 = arith.constant 0 : i32
    return %c0_i32, %c0_i32_0 : i32, i32
  }
  func.func @transform_3(%arg0: i32) -> (i32, i32) {
    %c0_i32 = arith.constant 0 : i32
    %c0_i32_0 = arith.constant 0 : i32
    %c0_i32_1 = arith.constant 0 : i32
    return %c0_i32, %c0_i32_0 : i32, i32
  }
  func.func @transform_4(%arg0: i32) -> (i32, i32) {
    %c0_i32 = arith.constant 0 : i32
    %c0_i32_0 = arith.constant 0 : i32
    %c0_i32_1 = arith.constant 0 : i32
    return %c0_i32, %c0_i32_0 : i32, i32
  }
  func.func @transform_5(%arg0: i32) -> (i32, i32) {
    %c0_i32 = arith.constant 0 : i32
    %c0_i32_0 = arith.constant 0 : i32
    %c0_i32_1 = arith.constant 0 : i32
    return %c0_i32, %c0_i32_0 : i32, i32
  }
  func.func @transform_6(%arg0: i32) -> (i32, i32) {
    %c0_i32 = arith.constant 0 : i32
    %c0_i32_0 = arith.constant 0 : i32
    %c0_i32_1 = arith.constant 0 : i32
    return %c0_i32, %c0_i32_0 : i32, i32
  }
  func.func @transform_7(%arg0: i32) -> (i32, i32) {
    %c0_i32 = arith.constant 0 : i32
    %c0_i32_0 = arith.constant 0 : i32
    %c0_i32_1 = arith.constant 0 : i32
    return %c0_i32, %c0_i32_0 : i32, i32
  }
  func.func @transform_8(%arg0: i32) -> (i32, i32) {
    %c0_i32 = arith.constant 0 : i32
    %c0_i32_0 = arith.constant 0 : i32
    %c0_i32_1 = arith.constant 0 : i32
    return %c0_i32, %c0_i32_0 : i32, i32
  }
  func.func @transform_9(%arg0: i32) -> (i32, i32) {
    %c0_i32 = arith.constant 0 : i32
    %c0_i32_0 = arith.constant 0 : i32
    return %arg0, %c0_i32 : i32, i32
  }
}

</mosaic_0001>

<bundles_post_ra>
// kernel: tpu_custom_call.1
= control target key start
LH: loop header
LB: loop body
LE: loop exit
PB: predicated region body
PF: predicated region fallthrough
CT: control target
= control target key end

     0   :  { %14 = vsyncpa [#allocation3], 0  ;;  %s1170_s0 = inlined_call_operand.hbm [shape: bf16[8,32], index: 0, kind: input, shape index: {}]   ;;  %s1171_s1 = inlined_call_operand.hbm [shape: bf16[32,64], index: 1, kind: input, shape index: {}]   ;;  %s1172_s2 = inlined_call_operand.vmem [shape: f32[1,64], index: 2, kind: input, shape index: {}]   ;;  %s1173_s3 = inlined_call_operand.hbm [shape: bf16[64,128], index: 3, kind: input, shape index: {}]   ;;  %s1174_s4 = inlined_call_operand.vmem [shape: f32[1,128], index: 4, kind: input, shape index: {}]   ;;  %s1175_s5 = inlined_call_operand.hbm [shape: bf16[128,256], index: 5, kind: input, shape index: {}]   ;;  %s1176_s6 = inlined_call_operand.vmem [shape: f32[1,256], index: 6, kind: input, shape index: {}]   ;;  %s1177_s7 = inlined_call_operand.hbm [shape: bf16[256,256], index: 7, kind: input, shape index: {}]   ;;  %s1178_s8 = inlined_call_operand.vmem [shape: f32[1,256], index: 8, kind: input, shape index: {}]   ;;  %s1179_s9 = inlined_call_operand.hbm [shape: bf16[8,256], index: 9, kind: output, shape index: {}]  }
   0x1   :  { %15 = vsyncpa [#allocation6], 0 }
   0x2   :  { %16 = vsyncpa [#allocation9], 0 }
   0x3   :  { %17 = vsyncpa [#allocation4], 0  ;;  %s1004_s30 = smov [#allocation5]   ;;  %s864_s13 = scalar_lea.hbm %s1171_s1, 256 }
   0x4   :  { %s33_s10 = sshll.u32 %s1004_s30, 4  ;;  %p865_p0 = scmp.ne.s32.totalorder %s1171_s1, %s864_s13  ;;  %s34_s10 = int_to_ptr.vmem [resolvable:$true] %s33_s10 }
   0x5   :  { %p868_p1 = scmp.lt.u32.totalorder %s864_s13, %s1171_s1 }
   0x7   :  { %p870_p2 = pnand %p868_p1, %p865_p0 }
   0x9   :  { %873 = shalt.err (!%p870_p2)
}
   0xa   :  { %s874_s18 = scalar_lea.vmem %s34_s10, 256  ;;  %p879_p4 = scmp.lt.s32.totalorder %s34_s10, %s34_s10 }
   0xb   :  { %p875_p3 = scmp.ne.s32.totalorder %s34_s10, %s874_s18  ;;  %p880_p5 = scmp.lt.s32.totalorder %s874_s18, %s874_s18 }
   0xd   :  { %p881_p6 = por %p880_p5, %p879_p4 }
   0xf   :  { %p882_p7 = pnand %p881_p6, %p875_p3 }
  0x11   :  { %885 = shalt.err (!%p882_p7)
}
  0x12   :  { %s1005_s19 = smov 64   ;;  %s1006_s20 = smov 4  }
  0x13   :  { %39 = dma.hbm_to_vmem [thread:$0]  %s1171_s1, 256, %s34_s10, [#allocation6], %s1005_s19, %s1005_s19, %s1006_s20  }
  0x14   :  { %s1007_s23 = smov [#allocation8]   ;;  %s886_s27 = scalar_lea.hbm %s1175_s5, 2048 }
  0x15   :  { %s61_s24 = sshll.u32 %s1007_s23, 4  ;;  %p887_p8 = scmp.ne.s32.totalorder %s1175_s5, %s886_s27  ;;  %s62_s24 = int_to_ptr.vmem [resolvable:$true] %s61_s24 }
  0x16   :  { %p890_p9 = scmp.lt.u32.totalorder %s886_s27, %s1175_s5 }
  0x18   :  { %p892_p10 = pnand %p890_p9, %p887_p8 }
  0x1a   :  { %895 = shalt.err (!%p892_p10)
}
  0x1b   :  { %s896_s12 = scalar_lea.vmem %s62_s24, 2048  ;;  %p901_p12 = scmp.lt.s32.totalorder %s62_s24, %s62_s24 }
  0x1c   :  { %p897_p11 = scmp.ne.s32.totalorder %s62_s24, %s896_s12  ;;  %p902_p13 = scmp.lt.s32.totalorder %s896_s12, %s896_s12 }
  0x1e   :  { %p903_p0 = por %p902_p13, %p901_p12 }
  0x20   :  { %p904_p1 = pnand %p903_p0, %p897_p11 }
  0x22   :  { %907 = shalt.err (!%p904_p1)
}
  0x23   :  { %s1008_s1 = smov 128   ;;  %s1009_s10 = smov 8  }
  0x24   :  { %67 = dma.hbm_to_vmem [thread:$0]  %s1175_s5, 2048, %s62_s24, [#allocation9], %s1008_s1, %s1008_s1, %s1009_s10  }
  0x25   :  { %s1010_s15 = smov [#allocation2]   ;;  %s1011_s17 = smov [#allocation7]  }
  0x26   :  { %s24_s16 = sshll.u32 %s1010_s15, 4  ;;  %s47_s18 = sshll.u32 %s1011_s17, 4  ;;  %s25_s16 = int_to_ptr.vmem [resolvable:$true] %s24_s16  ;;  %s1097_s18 = int_to_ptr.vmem [resolvable:$true] %s47_s18 }
  0x27   :  { %s908_s23 = scalar_lea.hbm %s1170_s0, 64 }
  0x28   :  { %p909_p2 = scmp.ne.s32.totalorder %s1170_s0, %s908_s23  ;;  %p912_p3 = scmp.lt.u32.totalorder %s908_s23, %s1170_s0 }
  0x2a   :  { %p914_p4 = pnand %p912_p3, %p909_p2 }
  0x2c   :  { %917 = shalt.err (!%p914_p4)
}
  0x2d   :  { %s918_s5 = scalar_lea.vmem %s25_s16, 64  ;;  %p923_p6 = scmp.lt.s32.totalorder %s25_s16, %s25_s16 }
  0x2e   :  { %p919_p5 = scmp.ne.s32.totalorder %s25_s16, %s918_s5  ;;  %p924_p7 = scmp.lt.s32.totalorder %s918_s5, %s918_s5 }
  0x30   :  { %p925_p8 = por %p924_p7, %p923_p6 }
  0x32   :  { %p926_p9 = pnand %p925_p8, %p919_p5 }
  0x34   :  { %929 = shalt.err (!%p926_p9)
}
  0x35   :  { %27 = dma.hbm_to_vmem [thread:$0]  %s1170_s0, 64, %s25_s16, [#allocation3]  }
  0x36   :  { %s930_s12 = scalar_lea.hbm %s1173_s3, 512 }
  0x37   :  { %p931_p10 = scmp.ne.s32.totalorder %s1173_s3, %s930_s12  ;;  %p934_p11 = scmp.lt.u32.totalorder %s930_s12, %s1173_s3 }
  0x39   :  { %p936_p12 = pnand %p934_p11, %p931_p10 }
  0x3b   :  { %939 = shalt.err (!%p936_p12)
}
  0x3c   :  { %s940_s21 = scalar_lea.vmem %s1097_s18, 512  ;;  %p945_p0 = scmp.lt.s32.totalorder %s1097_s18, %s1097_s18 }
  0x3d   :  { %p941_p13 = scmp.ne.s32.totalorder %s1097_s18, %s940_s21  ;;  %p946_p1 = scmp.lt.s32.totalorder %s940_s21, %s940_s21 }
  0x3f   :  { %p947_p2 = por %p946_p1, %p945_p0 }
  0x41   :  { %p948_p3 = pnand %p947_p2, %p941_p13 }
  0x43   :  { %951 = shalt.err (!%p948_p3)
}
  0x44   :  { %53 = dma.hbm_to_vmem [thread:$0]  %s1173_s3, 512, %s1097_s18, [#allocation6], %s1005_s19, %s1005_s19, %s1006_s20  }
  0x45   :  { %s1012_s22 = smov [#allocation10]   ;;  %s952_s27 = scalar_lea.hbm %s1177_s7, 4096 }
  0x46   :  { %s75_s23 = sshll.u32 %s1012_s22, 4  ;;  %p953_p4 = scmp.ne.s32.totalorder %s1177_s7, %s952_s27  ;;  %s76_s23 = int_to_ptr.vmem [resolvable:$true] %s75_s23 }
  0x47   :  { %p956_p5 = scmp.lt.u32.totalorder %s952_s27, %s1177_s7 }
  0x49   :  { %p958_p6 = pnand %p956_p5, %p953_p4 }
  0x4b   :  { %961 = shalt.err (!%p958_p6)
}
  0x4c   :  { %s962_s30 = scalar_lea.vmem %s76_s23, 4096  ;;  %p967_p8 = scmp.lt.s32.totalorder %s76_s23, %s76_s23 }
  0x4d   :  { %p963_p7 = scmp.ne.s32.totalorder %s76_s23, %s962_s30  ;;  %p968_p9 = scmp.lt.s32.totalorder %s962_s30, %s962_s30 }
  0x4f   :  { %p969_p10 = por %p968_p9, %p967_p8 }
  0x51   :  { %p970_p11 = pnand %p969_p10, %p963_p7 }
  0x53   :  { %973 = shalt.err (!%p970_p11)
}
  0x54   :  { %81 = dma.hbm_to_vmem [thread:$0]  %s1177_s7, 4096, %s76_s23, [#allocation9], %s1008_s1, %s1008_s1, %s1009_s10  }
  0x55   :  { %996 = dma.done.wait [#allocation3], 64  }
  0x56   :  { %997 = vsyncadd [#allocation3], 4294967232 }
  0x57   :  { %998 = dma.done.wait [#allocation6], 768  }
  0x58   :  { %999 = vsyncadd [#allocation6], 4294966528 }
  0x59   :  { %1000 = dma.done.wait [#allocation9], 6144  }
  0x5a   :  { %1001 = vsyncadd [#allocation9], 4294961152  ;;  %v1013_v0 = vmov 0.0   ;;  %vm1014_vm0 = vmmov 0   ;;  %v782_v1 = vld [vmem:[#allocation5] sm:$0xff]   ;;  %v783_v2 = vld [vmem:[#allocation5 + $0x8] sm:$0xff]  }
  0x5b   :  { %749 = vmatprep.subr.bf16.mxu0 %v1013_v0  ;;  %753 = vmatprep.mubr.msk.bf16.mxu0 %vm1014_vm0, %v1013_v0  ;;  %v100_v3 = vld [vmem:[#allocation2] sm:$0xf]  ;;  %v784_v4 = vld [vmem:[#allocation7] sm:$0xff]   ;;  %vm124_vm1 = vcmask 261120   ;;  %v786_v6 = vld [vmem:[#allocation7 + $0x10] sm:$0xff]   ;;  %vm209_vm2 = vcmask 523264  }
  0x5c   :  { %750 = vmatpush3.bf16.msra.mxu0 %v782_v1  ;;  %v785_v5 = vld [vmem:[#allocation7 + $0x8] sm:$0xff]   ;;  %v787_v7 = vld [vmem:[#allocation7 + $0x18] sm:$0xff]   ;;  %v1015_v32 = vmov 0  }
  0x5d   :  { %751 = vmatprep.subr.bf16.mxu0 %v1013_v0  ;;  %v790_v8 = vld [vmem:[#allocation8 + $0x4] ss:$8 sps:$4 sm:$0xff]   ;;  %v788_v16 = vld [vmem:[#allocation8] ss:$8 sps:$4 sm:$0xff]   ;;  %v793_v18 = vld [vmem:[#allocation8 + $0x14] ss:$8 sps:$4 sm:$0xff]  }
  0x5e   :  { %v681_v9 = vld [vmem:[%s1172_s2] ss:$0 sm:$0xff]  ;;  %v791_v19 = vld [vmem:[#allocation8 + $0x10] ss:$8 sps:$4 sm:$0xff]   ;;  %v794_v21 = vld [vmem:[#allocation8 + $0x20] ss:$8 sps:$4 sm:$0xff]  }
  0x5f   :  { %v796_v20 = vld [vmem:[#allocation8 + $0x24] ss:$8 sps:$4 sm:$0xff]   ;;  %v799_v22 = vld [vmem:[#allocation8 + $0x34] ss:$8 sps:$4 sm:$0xff]   ;;  %v797_v23 = vld [vmem:[#allocation8 + $0x30] ss:$8 sps:$4 sm:$0xff]  }
  0x60   :  { %752 = vmatpush3.bf16.msra.mxu0 %v783_v2  ;;  %v802_v24 = vld [vmem:[#allocation8 + $0x44] ss:$8 sps:$4 sm:$0xff]   ;;  %v800_v25 = vld [vmem:[#allocation8 + $0x40] ss:$8 sps:$4 sm:$0xff]   ;;  %v805_v26 = vld [vmem:[#allocation8 + $0x54] ss:$8 sps:$4 sm:$0xff]  }
  0x61   :  { %757 = vmatprep.subr.bf16.mxu0 %v1013_v0  ;;  %v803_v27 = vld [vmem:[#allocation8 + $0x50] ss:$8 sps:$4 sm:$0xff]   ;;  %v808_v28 = vld [vmem:[#allocation8 + $0x64] ss:$8 sps:$4 sm:$0xff]   ;;  %v806_v29 = vld [vmem:[#allocation8 + $0x60] ss:$8 sps:$4 sm:$0xff]  }
  0x62   :  { %v811_v30 = vld [vmem:[#allocation8 + $0x74] ss:$8 sps:$4 sm:$0xff]   ;;  %v809_v31 = vld [vmem:[#allocation8 + $0x70] ss:$8 sps:$4 sm:$0xff]   ;;  %v812_v33 = vld [vmem:[#allocation10 + $0x4] ss:$8 sps:$4 sm:$0xff]  }
  0x63   :  { %754 = vmatmul.mubr.msk.bf16.vlgmr.msra.gmra.mrb[0].mxu0 %vm124_vm1, %v100_v3  ;;  %v814_v34 = vld [vmem:[#allocation10] ss:$8 sps:$4 sm:$0xff]   ;;  %v815_v35 = vld [vmem:[#allocation10 + $0x14] ss:$8 sps:$4 sm:$0xff]   ;;  %612 = vmatprep.subr.bf16.mxu1 %v812_v33  ;;  %v817_v36 = vld [vmem:[#allocation10 + $0x10] ss:$8 sps:$4 sm:$0xff]  }
  0x64   :  { %758 = vmatpush3.bf16.msra.mxu0 %v784_v4  ;;  %765 = vmatprep.mubr.msk.bf16.mxu0 %vm1014_vm0, %v1013_v0  ;;  %v818_v37 = vld [vmem:[#allocation10 + $0x24] ss:$8 sps:$4 sm:$0xff]   ;;  %v820_v38 = vld [vmem:[#allocation10 + $0x20] ss:$8 sps:$4 sm:$0xff]   ;;  %v821_v39 = vld [vmem:[#allocation10 + $0x34] ss:$8 sps:$4 sm:$0xff]  }
  0x65   :  { %759 = vmatprep.subr.bf16.mxu0 %v1013_v0  ;;  %613 = vmatpush1.bf16.msra.mxu1 %v814_v34  ;;  %v823_v40 = vld [vmem:[#allocation10 + $0x30] ss:$8 sps:$4 sm:$0xff]   ;;  %v824_v41 = vld [vmem:[#allocation10 + $0x44] ss:$8 sps:$4 sm:$0xff]   ;;  %v826_v42 = vld [vmem:[#allocation10 + $0x40] ss:$8 sps:$4 sm:$0xff]  }
  0x66   :  { %614 = vmatprep.subr.bf16.mxu1 %v815_v35  ;;  %v827_v43 = vld [vmem:[#allocation10 + $0x54] ss:$8 sps:$4 sm:$0xff]   ;;  %v829_v44 = vld [vmem:[#allocation10 + $0x50] ss:$8 sps:$4 sm:$0xff]   ;;  %v830_v45 = vld [vmem:[#allocation10 + $0x64] ss:$8 sps:$4 sm:$0xff]  }
  0x67   :  { %v832_v46 = vld [vmem:[#allocation10 + $0x60] ss:$8 sps:$4 sm:$0xff]   ;;  %v833_v47 = vld [vmem:[#allocation10 + $0x74] ss:$8 sps:$4 sm:$0xff]   ;;  %v835_v48 = vld [vmem:[#allocation10 + $0x70] ss:$8 sps:$4 sm:$0xff]  }
  0x68   :  { %760 = vmatpush3.bf16.msra.mxu0 %v785_v5  ;;  %v836_v49 = vld [vmem:[#allocation10 + $0x84] ss:$8 sps:$4 sm:$0xff]   ;;  %v838_v50 = vld [vmem:[#allocation10 + $0x80] ss:$8 sps:$4 sm:$0xff]   ;;  %v839_v51 = vld [vmem:[#allocation10 + $0x94] ss:$8 sps:$4 sm:$0xff]  }
  0x69   :  { %761 = vmatprep.subr.bf16.mxu0 %v1013_v0  ;;  %615 = vmatpush1.bf16.msra.mxu1 %v817_v36  ;;  %v841_v52 = vld [vmem:[#allocation10 + $0x90] ss:$8 sps:$4 sm:$0xff]   ;;  %v842_v53 = vld [vmem:[#allocation10 + $0xa4] ss:$8 sps:$4 sm:$0xff]   ;;  %v844_v54 = vld [vmem:[#allocation10 + $0xa0] ss:$8 sps:$4 sm:$0xff]  }
  0x6a   :  { %616 = vmatprep.subr.bf16.mxu1 %v818_v37  ;;  %v845_v55 = vld [vmem:[#allocation10 + $0xb4] ss:$8 sps:$4 sm:$0xff]   ;;  %v847_v56 = vld [vmem:[#allocation10 + $0xb0] ss:$8 sps:$4 sm:$0xff]   ;;  %v848_v57 = vld [vmem:[#allocation10 + $0xc4] ss:$8 sps:$4 sm:$0xff]  }
  0x6b   :  { %v850_v58 = vld [vmem:[#allocation10 + $0xc0] ss:$8 sps:$4 sm:$0xff]   ;;  %v851_v59 = vld [vmem:[#allocation10 + $0xd4] ss:$8 sps:$4 sm:$0xff]   ;;  %v853_v60 = vld [vmem:[#allocation10 + $0xd0] ss:$8 sps:$4 sm:$0xff]  }
  0x6c   :  { %762 = vmatpush3.bf16.msra.mxu0 %v786_v6  ;;  %v685_v61 = vld [vmem:[%s1174_s4] ss:$0 sm:$0xff]  ;;  %v856_v6 = vld [vmem:[#allocation10 + $0xe0] ss:$8 sps:$4 sm:$0xff]  }
  0x6d   :  { %763 = vmatprep.subr.bf16.mxu0 %v1013_v0  ;;  %617 = vmatpush1.bf16.msra.mxu1 %v820_v38  ;;  %v854_v5 = vld [vmem:[#allocation10 + $0xe4] ss:$8 sps:$4 sm:$0xff]  }
  0x6e   :  { %618 = vmatprep.subr.bf16.mxu1 %v821_v39 }
  0x70   :  { %764 = vmatpush3.bf16.msra.mxu0 %v787_v7  ;;  %v857_v7 = vld [vmem:[#allocation10 + $0xf4] ss:$8 sps:$4 sm:$0xff]  }
  0x71   :  { %363 = vmatprep.subr.bf16.mxu0 %v790_v8  ;;  %619 = vmatpush1.bf16.msra.mxu1 %v823_v40  ;;  %v859_v8 = vld [vmem:[#allocation10 + $0xf0] ss:$8 sps:$4 sm:$0xff]  }
  0x72   :  { %620 = vmatprep.subr.bf16.mxu1 %v824_v41 }
  0x75   :  { %621 = vmatpush1.bf16.msra.mxu1 %v826_v42 }
  0x76   :  { %622 = vmatprep.subr.bf16.mxu1 %v827_v43 }
  0x79   :  { %623 = vmatpush1.bf16.msra.mxu1 %v829_v44 }
  0x7a   :  { %624 = vmatprep.subr.bf16.mxu1 %v830_v45 }
  0x7d   :  { %625 = vmatpush1.bf16.msra.mxu1 %v832_v46 }
  0x7e   :  { %626 = vmatprep.subr.bf16.mxu1 %v833_v47 }
  0x81   :  { %627 = vmatpush1.bf16.msra.mxu1 %v835_v48 }
  0x82   :  { %628 = vmatprep.subr.bf16.mxu1 %v836_v49 }
  0x85   :  { %629 = vmatpush1.bf16.msra.mxu1 %v838_v50 }
  0x86   :  { %630 = vmatprep.subr.bf16.mxu1 %v839_v51 }
  0x89   :  { %631 = vmatpush1.bf16.msra.mxu1 %v841_v52 }
  0x8a   :  { %632 = vmatprep.subr.bf16.mxu1 %v842_v53 }
  0x8d   :  { %633 = vmatpush1.bf16.msra.mxu1 %v844_v54 }
  0x8e   :  { %634 = vmatprep.subr.bf16.mxu1 %v845_v55 }
  0x91   :  { %635 = vmatpush1.bf16.msra.mxu1 %v847_v56 }
  0x92   :  { %636 = vmatprep.subr.bf16.mxu1 %v848_v57 }
  0x95   :  { %637 = vmatpush1.bf16.msra.mxu1 %v850_v58 }
  0x96   :  { %638 = vmatprep.subr.bf16.mxu1 %v851_v59 }
  0x99   :  { %639 = vmatpush1.bf16.msra.mxu1 %v853_v60 }
  0x9a   :  { %640 = vmatprep.subr.bf16.mxu1 %v854_v5 }
  0x9d   :  { %641 = vmatpush1.bf16.msra.mxu1 %v856_v6 }
  0x9e   :  { %642 = vmatprep.subr.bf16.mxu1 %v857_v7 }
  0xa1   :  { %643 = vmatpush1.bf16.msra.mxu1 %v859_v8 }
 0x136   :  { %v162_v10 = vpop.f32.mrb[0].mxu0 }
 0x137   :  { %v163_v11 = vadd.f32 %v681_v9, %v162_v10  ;;  %v755_v12 = vpop.f32.mrb[1].mxu0  ;;  %v273_v9 = vlaneseq }
 0x138   :  { %v165_v13 = vpop.f32.mrb[2].mxu0  ;;  %v271_v12 = vld [vmem:[%s1176_s6] sm:$0x3]  ;;  %s1016_s6 = smov [#allocation11]  }
 0x139   :  { %v168_v14 = vmax.f32 %v163_v11, 0.0  ;;  %v756_v15 = vpop.f32.mrb[3].mxu0  ;;  %v274_v10 = vshrl.u32 %v273_v9, 7  ;;  %s670_s12 = sshll.u32 %s1016_s6, 4  ;;  %s671_s12 = int_to_ptr.vmem [resolvable:$true] %s670_s12 }
 0x13a   :  { %s974_s13 = scalar_lea.vmem %s671_s12, 128  ;;  %p979_p13 = scmp.lt.s32.totalorder %s671_s12, %s671_s12 }
 0x13b   :  { %v169_v17 = vpack.c.bf16 %v168_v14, %v168_v14  ;;  %v275_v11 = vsub.s32 0, %v274_v10  ;;  %v279_v13 = vsub.s32 1, %v274_v10  ;;  %p975_p12 = scmp.ne.s32.totalorder %s671_s12, %s974_s13  ;;  %p980_p0 = scmp.lt.s32.totalorder %s974_s13, %s974_s13 }
 0x13d   :  { %766 = vmatmul.mubr.msk.bf16.vlgmr.msra.gmra.mrb[4].mxu0 %vm209_vm2, %v169_v17  ;;  %v276_v14 = vrot.slane %v271_v12, %v275_v11  ;;  %v280_v15 = vrot.slane %v271_v12, %v279_v13  ;;  %p981_p1 = por %p980_p0, %p979_p13 }
 0x13e   :  { %364 = vmatpush1.bf16.msra.mxu0 %v788_v16  ;;  %395 = vmatprep.mubr.bf16.mxu0 %v1015_v32 }
 0x13f   :  { %365 = vmatprep.subr.bf16.mxu0 %v793_v18  ;;  %p982_p2 = pnand %p981_p1, %p975_p12 }
 0x142   :  { %366 = vmatpush1.bf16.msra.mxu0 %v791_v19 }
 0x143   :  { %367 = vmatprep.subr.bf16.mxu0 %v796_v20 }
 0x146   :  { %368 = vmatpush1.bf16.msra.mxu0 %v794_v21 }
 0x147   :  { %369 = vmatprep.subr.bf16.mxu0 %v799_v22 }
 0x14a   :  { %370 = vmatpush1.bf16.msra.mxu0 %v797_v23 }
 0x14b   :  { %371 = vmatprep.subr.bf16.mxu0 %v802_v24 }
 0x14e   :  { %372 = vmatpush1.bf16.msra.mxu0 %v800_v25 }
 0x14f   :  { %373 = vmatprep.subr.bf16.mxu0 %v805_v26  ;;  %v440_v26 = vld [vmem:[%s1178_s8] sm:$0x3] }
 0x152   :  { %374 = vmatpush1.bf16.msra.mxu0 %v803_v27  ;;  %v445_v27 = vrot.slane %v440_v26, %v275_v11 }
 0x153   :  { %375 = vmatprep.subr.bf16.mxu0 %v808_v28  ;;  %v449_v28 = vrot.slane %v440_v26, %v279_v13 }
 0x156   :  { %376 = vmatpush1.bf16.msra.mxu0 %v806_v29 }
 0x157   :  { %377 = vmatprep.subr.bf16.mxu0 %v811_v30 }
 0x15a   :  { %378 = vmatpush1.bf16.msra.mxu0 %v809_v31 }
 0x210   :  { %v247_v62 = vpop.f32.mrb[4].mxu0 }
 0x211   :  { %v248_v63 = vadd.f32 %v685_v61, %v247_v62  ;;  %v767_v0 = vpop.f32.mrb[5].mxu0 }
 0x212   :  { %v250_v1 = vpop.f32.mrb[6].mxu0 }
 0x213   :  { %v253_v2 = vmax.f32 %v248_v63, 0.0  ;;  %v768_v3 = vpop.f32.mrb[7].mxu0 }
 0x215   :  { %v254_v4 = vpack.c.bf16 %v253_v2, %v253_v2 }
 0x217   :  { %396 = vmatmul.mubr.bf16.vlgmr.msra.gmra.mrb[8].mxu0 %v254_v4 }
 0x2ea   :  { %v397_v16 = vpop.f32.mrb[8].mxu0 }
 0x2eb   :  { %v398_v17 = vadd.f32 %v397_v16, %v276_v14  ;;  %v399_v18 = vpop.f32.mrb[9].mxu0 }
 0x2ec   :  { %v400_v19 = vadd.f32 %v399_v18, %v280_v15  ;;  %v401_v20 = vpop.f32.mrb[10].mxu0 }
 0x2ed   :  { %v404_v21 = vmax.f32 %v398_v17, 0.0  ;;  %v402_v22 = vpop.f32.mrb[11].mxu0 }
 0x2ee   :  { %v405_v23 = vmax.f32 %v400_v19, 0.0 }
 0x2ef   :  { %v406_v25 = vpack.c.bf16 %v404_v21, %v404_v21 }
 0x2f0   :  { %v407_v24 = vpack.c.bf16 %v405_v23, %v405_v23 }
 0x2f2   :  { %644 = vmatprep.mubr.bf16.mxu1 %v407_v24 }
 0x2f3   :  { %645 = vmatmul.mubr.bf16.vlgmr.msra.gmra.mrb[0].mxu1 %v406_v25 }
 0x3c6   :  { %v646_v29 = vpop.f32.mrb[0].mxu1 }
 0x3c7   :  { %v647_v30 = vadd.f32 %v646_v29, %v445_v27  ;;  %v648_v31 = vpop.f32.mrb[1].mxu1 }
 0x3c8   :  { %v649_v32 = vadd.f32 %v648_v31, %v449_v28  ;;  %v650_v33 = vpop.f32.mrb[2].mxu1 }
 0x3c9   :  { %860 = vtanh.f32 %v647_v30  ;;  %v651_v34 = vpop.f32.mrb[3].mxu1 }
 0x3ca   :  { %862 = vtanh.f32 %v649_v32 }
 0x3d3   :  { %v861_v35 = vpop.eup %860 }
 0x3d4   :  { %v863_v36 = vpop.eup %862 }
 0x3d5   :  { %v740_v37 = vpack.c.bf16 %v863_v36, %v861_v35 }
 0x3d7   :  { %663 = vst [vmem:[#allocation11] sm:$0xff] %v740_v37 }
 0x3d8   :  { %985 = shalt.err (!%p982_p2)
}
 0x3d9   :  { %s986_s15 = scalar_lea.hbm %s1179_s9, 128 }
 0x3da   :  { %p987_p3 = scmp.ne.s32.totalorder %s1179_s9, %s986_s15  ;;  %p990_p4 = scmp.lt.u32.totalorder %s986_s15, %s1179_s9 }
 0x3dc   :  { %p992_p5 = pnand %p990_p4, %p987_p3 }
 0x3de   :  { %995 = shalt.err (!%p992_p5)
}
 0x3df   :  { %673 = dma.vmem_to_hbm [thread:$0]  %s671_s12, 128, %s1179_s9, [#allocation4]  }
 0x3e0   :  { %1002 = dma.done.wait [#allocation4], 128  }
 0x3e1   :  { %1003 = vsyncadd [#allocation4], 4294967168 }
 0x3e2   :  { %677 = vsyncpa [#allocation3], 1 }
 0x3e3   :  { %678 = vsyncpa [#allocation6], 1 }
 0x3e4   :  { %679 = vsyncpa [#allocation9], 1 }
 0x3e5   :  { %680 = vsyncpa [#allocation4], 1 }

</bundles_post_ra>
